<compile_context>
chip_gen: v6e
topology: v6e:2x2x1
jax: 0.10.0
libtpu: 0.0.40
codegen_flags: <defaults>
</compile_context>

<pallas_src>
import jax
import jax.numpy as jnp
from jax import lax
from jax.experimental import pallas as pl
from jax.experimental.pallas import tpu as pltpu


# ----------------------------------------------------------------------------
# tiling helpers
# ----------------------------------------------------------------------------
def _pick_row_tile(m, cap=256):
    """Largest row tile that divides m and is a multiple of 8; for small m keep
    at least 2 grid steps so both v7x TensorCores get work."""
    cap = cap if m > cap else max(8, m // 2)
    for t in (256, 128, 64, 32, 16, 8):
        if t <= cap and m % t == 0:
            return t
    return m


def _pick_chunk(t):
    """Time-chunk length for the WKV recurrence (divides T, multiple of 8)."""
    for c in (64, 32, 16, 8):
        if c <= t and t % c == 0:
            return c
    return t


# ----------------------------------------------------------------------------
# Fused token-mix + LoRA + r/k/v/decay projection kernel (grid over row tiles).
# ----------------------------------------------------------------------------
def _mix_proj_kernel(x_ref, dx_ref, maa_x_ref, maa_rkvw_ref, maa_w1_ref,
                     maa_w2_ref, wr_ref, wk_ref, wv_ref, dw1_ref, dw2_ref,
                     tdecay_ref, r_ref, k_ref, v_ref, w_ref):
    x = x_ref[...].astype(jnp.float32)            # (tm, C)
    dx = dx_ref[...].astype(jnp.float32)          # (tm, C)
    maa_vecs = maa_rkvw_ref[...].astype(jnp.float32)   # (4, C) = [r, k, v, w]

    xxx = x + dx * maa_x_ref[...].astype(jnp.float32)
    lora = jnp.tanh(jnp.dot(xxx, maa_w1_ref[...],
                            preferred_element_type=jnp.float32))    # (tm, 4D)
    d_mix = maa_w2_ref.shape[1]

    def mixed(f):
        m_f = jnp.dot(lora[:, f * d_mix:(f + 1) * d_mix], maa_w2_ref[f],
                      preferred_element_type=jnp.float32)           # (tm, C)
        return x + dx * (maa_vecs[f:f + 1, :] + m_f)

    xr, xk, xv, xw = mixed(0), mixed(1), mixed(2), mixed(3)

    r_ref[...] = jnp.dot(xr, wr_ref[...], preferred_element_type=jnp.float32)
    k_ref[...] = jnp.dot(xk, wk_ref[...], preferred_element_type=jnp.float32)
    v_ref[...] = jnp.dot(xv, wv_ref[...], preferred_element_type=jnp.float32)
    w_ref[...] = tdecay_ref[...] + jnp.dot(
        jnp.tanh(jnp.dot(xw, dw1_ref[...], preferred_element_type=jnp.float32)),
        dw2_ref[...], preferred_element_type=jnp.float32)


# ----------------------------------------------------------------------------
# Chunked WKV6 recurrence + LayerNorm(dim_att) + output projection.
# Grid = (B, num_chunks); the output state block (H, N, N) is resident across
# the chunk axis and acts as the carry.
#   y_t[j]   = sum_i r_t[i] * (S_{t-1}[i,j] + u[i] * k_t[i] * v_t[j])
#   S_t[i,j] = exp(-exp(w_t[i])) * S_{t-1}[i,j] + k_t[i] * v_t[j]
# ----------------------------------------------------------------------------
def _wkv6_ln_out_kernel(s_in_ref, r_ref, k_ref, v_ref, w_ref, u_ref,
                        ln_g_ref, ln_b_ref, wo_ref, o_ref, s_out_ref):
    tc = r_ref.shape[0]                        # (Tc, A)
    n_head, n, _ = s_out_ref.shape             # (H, N, N)

    chunk = pl.program_id(1)

    @pl.when(chunk == 0)
    def _init():
        s_out_ref[...] = s_in_ref[...].astype(jnp.float32)

    r_f = r_ref[...].astype(jnp.float32)
    k_f = k_ref[...].astype(jnp.float32)
    v_f = v_ref[...].astype(jnp.float32)
    ru_f = r_f * u_ref[...].astype(jnp.float32)                # r * u (bonus)
    neg_ew = -jnp.exp(w_ref[...].astype(jnp.float32))          # (Tc, A) log-decay

    trow = lax.broadcasted_iota(jnp.int32, (tc, tc), 0)        # query time t
    tcol = lax.broadcasted_iota(jnp.int32, (tc, tc), 1)        # key time s
    ltri_incl = (tcol <= trow).astype(jnp.float32)             # cumsum operator
    strict = tcol < trow
    eye_tc = (tcol == trow).astype(jnp.float32)
    nrow = lax.broadcasted_iota(jnp.int32, (n, n), 0)
    ncol = lax.broadcasted_iota(jnp.int32, (n, n), 1)
    eye_n = (nrow == ncol).astype(jnp.float32)

    # Cumulative log-decays + exp, done ONCE over the full (Tc, H*N) width.
    clw_in = jnp.dot(ltri_incl, neg_ew, preferred_element_type=jnp.float32)
    clw_ex = clw_in - neg_ew
    clw_tot = clw_in[tc - 1:tc, :]                             # (1, A)

    r_d = r_f * jnp.exp(clw_ex)            # decayed queries (chunk-start ref.)
    k_i = k_f * jnp.exp(-clw_in)           # inverse-decayed keys
    k_e = k_f * jnp.exp(clw_tot - clw_in)  # keys decayed to chunk end
    dec_tot = jnp.exp(clw_tot)             # whole-chunk decay  (1, A)

    ys = []
    for h in range(n_head):                                    # static, small
        sl = slice(h * n, (h + 1) * n)                         # lane slice
        s0 = s_out_ref[h]                                      # (N, N) fp32

        # intra-chunk scores: strict-lower decayed r.k, diagonal = u-bonus
        sc_low = lax.dot_general(r_d[:, sl], k_i[:, sl],
                                 (((1,), (1,)), ((), ())),
                                 preferred_element_type=jnp.float32)
        sc_diag = lax.dot_general(ru_f[:, sl], k_f[:, sl],
                                  (((1,), (1,)), ((), ())),
                                  preferred_element_type=jnp.float32)
        score = jnp.where(strict, sc_low, 0.0) + eye_tc * sc_diag

        y_h = (jnp.dot(score, v_f[:, sl], preferred_element_type=jnp.float32)
               + jnp.dot(r_d[:, sl], s0, preferred_element_type=jnp.float32))
        ys.append(y_h)

        # state update: S <- diag(dec_tot) @ S + k_e^T @ v
        dg = eye_n * dec_tot[:, sl]
        kv = lax.dot_general(k_e[:, sl], v_f[:, sl],
                             (((0,), (0,)), ((), ())),
                             preferred_element_type=jnp.float32)
        s_out_ref[h] = jnp.dot(dg, s0, preferred_element_type=jnp.float32) + kv

    y = jnp.concatenate(ys, axis=1)                            # (Tc, A) fp32

    # Fused LayerNorm(dim_att) + output projection (saves a y HBM round-trip).
    mean = jnp.mean(y, axis=-1, keepdims=True)
    yc = y - mean
    var = jnp.mean(yc * yc, axis=-1, keepdims=True)
    yn = yc * lax.rsqrt(var + 1e-5) * ln_g_ref[...] + ln_b_ref[...]
    o_ref[...] = jnp.dot(yn, wo_ref[...],
                         preferred_element_type=jnp.float32).astype(o_ref.dtype)


# ----------------------------------------------------------------------------
# Full TMix_x060b forward (Pallas path).
# ----------------------------------------------------------------------------
def tmix_forward_pallas(p, x, last_shift_state, last_wkv_state, chunk_len=None):
    B, T, C = x.shape
    H, N = p["time_faaaa"].shape
    A = H * N
    M = B * T

    dxprev = jnp.concatenate([last_shift_state[:, None, :], x[:, :-1]], axis=1) - x
    new_shift = x[:, -1]

    d_mix = p["maa_w1"].shape[1] // 4
    d_decay = p["decay_w1"].shape[1]
    maa_rkvw = jnp.concatenate(
        [p["time_maa_r"].reshape(1, C), p["time_maa_k"].reshape(1, C),
         p["time_maa_v"].reshape(1, C), p["time_maa_w"].reshape(1, C)], axis=0)

    tm = _pick_row_tile(M)
    grid_m = M // tm
    row_spec_c = pl.BlockSpec((tm, C), lambda i: (i, 0))
    row_spec_a = pl.BlockSpec((tm, A), lambda i: (i, 0))

    def full1(shape):
        return pl.BlockSpec(shape, lambda i: (0,) * len(shape))

    # TODO(synk): at production C/A (2k-4k) the whole-weight blocks below exceed
    # v7x's 64 MiB VMEM; they would need an additional K/N tiling grid axis.
    r, k, v, w = pl.pallas_call(
        _mix_proj_kernel,
        out_shape=tuple(jax.ShapeDtypeStruct((M, A), jnp.float32)
                        for _ in range(4)),
        grid=(grid_m,),
        in_specs=[row_spec_c, row_spec_c,
                  full1((1, C)), full1((4, C)),
                  full1((C, 4 * d_mix)), full1((4, d_mix, C)),
                  full1((C, A)), full1((C, A)), full1((C, A)),
                  full1((C, d_decay)), full1((d_decay, A)), full1((1, A))],
        out_specs=tuple(row_spec_a for _ in range(4)),
        compiler_params=pltpu.CompilerParams(
            dimension_semantics=("parallel",)),
    )(x.reshape(M, C), dxprev.reshape(M, C),
      p["time_maa_x"].reshape(1, C), maa_rkvw,
      p["maa_w1"], p["maa_w2"], p["w_r"], p["w_k"], p["w_v"],
      p["decay_w1"], p["decay_w2"], p["time_decay"].reshape(1, A))

    # ---- chunked WKV6 + fused LayerNorm + output projection ----
    if chunk_len is not None and T % chunk_len == 0:
        Tc = chunk_len
    else:
        Tc = _pick_chunk(T)
    NC = T // Tc

    seq_spec = pl.BlockSpec((None, Tc, A), lambda b, c: (b, c, 0))
    st_spec = pl.BlockSpec((None, H, N, N), lambda b, c: (b, 0, 0, 0))
    vec_a = pl.BlockSpec((1, A), lambda b, c: (0, 0))
    wo_spec = pl.BlockSpec((A, C), lambda b, c: (0, 0))
    out_spec = pl.BlockSpec((None, Tc, C), lambda b, c: (b, c, 0))

    out, new_wkv = pl.pallas_call(
        _wkv6_ln_out_kernel,
        out_shape=(jax.ShapeDtypeStruct((B, T, C), jnp.float32),
                   jax.ShapeDtypeStruct((B, H, N, N), jnp.float32)),
        grid=(B, NC),
        in_specs=[st_spec, seq_spec, seq_spec, seq_spec, seq_spec,
                  vec_a, vec_a, vec_a, wo_spec],
        out_specs=(out_spec, st_spec),
        compiler_params=pltpu.CompilerParams(
            dimension_semantics=("parallel", "arbitrary")),
    )(last_wkv_state, r.reshape(B, T, A), k.reshape(B, T, A),
      v.reshape(B, T, A), w.reshape(B, T, A),
      p["time_faaaa"].reshape(1, A),
      p["ln_g"].reshape(1, A), p["ln_b"].reshape(1, A), p["w_o"])

    return out, (new_wkv, new_shift)


# ----------------------------------------------------------------------------
# Pure-JAX reference (mirrors the PyTorch forward).
# ----------------------------------------------------------------------------
def tmix_forward_ref(p, x, last_shift_state, last_wkv_state):
    B, T, C = x.shape
    H, N = p["time_faaaa"].shape
    A = H * N
    hp = lax.Precision.HIGHEST

    dxprev = jnp.concatenate([last_shift_state[:, None, :], x[:, :-1]], axis=1) - x
    new_shift = x[:, -1]

    xxx = x + dxprev * p["time_maa_x"]
    lora = jnp.tanh(jnp.einsum("btc,cd->btd", xxx, p["maa_w1"], precision=hp))
    D = lora.shape[-1] // 4
    lora = lora.reshape(B * T, 4, D).transpose(1, 0, 2)
    m = jnp.einsum("fbd,fdc->fbc", lora, p["maa_w2"], precision=hp).reshape(4, B, T, C)
    mr, mk, mv, mw = m[0], m[1], m[2], m[3]

    xr = x + dxprev * (p["time_maa_r"] + mr)
    xk = x + dxprev * (p["time_maa_k"] + mk)
    xv = x + dxprev * (p["time_maa_v"] + mv)
    xw = x + dxprev * (p["time_maa_w"] + mw)

    r = jnp.einsum("btc,ca->bta", xr, p["w_r"], precision=hp)
    k = jnp.einsum("btc,ca->bta", xk, p["w_k"], precision=hp)
    v = jnp.einsum("btc,ca->bta", xv, p["w_v"], precision=hp)
    w = p["time_decay"] + jnp.einsum(
        "btd,da->bta",
        jnp.tanh(jnp.einsum("btc,cd->btd", xw, p["decay_w1"], precision=hp)),
        p["decay_w2"], precision=hp)

    def to_bhtn(z):
        return z.reshape(B, T, H, N).transpose(0, 2, 1, 3)

    r4, k4, v4, w4 = map(to_bhtn, (r, k, v, w))
    u = p["time_faaaa"]
    wdec = jnp.exp(-jnp.exp(w4))

    def step(s, inp):
        r_t, k_t, v_t, wd_t = inp                                        # (B,H,N)
        at = k_t[..., :, None] * v_t[..., None, :]                       # (B,H,N,N)
        y_t = jnp.einsum("bhi,bhij->bhj", r_t,
                         s + u[None, :, :, None] * at, precision=hp)
        return wd_t[..., :, None] * s + at, y_t

    seq = tuple(z.transpose(2, 0, 1, 3) for z in (r4, k4, v4, wdec))     # (T,B,H,N)
    new_wkv, ys = lax.scan(step, last_wkv_state, seq)
    y = ys.transpose(1, 0, 2, 3).reshape(B, T, A)

    mean = jnp.mean(y, -1, keepdims=True)
    yc = y - mean
    var = jnp.mean(yc * yc, -1, keepdims=True)
    yn = yc * lax.rsqrt(var + 1e-5) * p["ln_g"] + p["ln_b"]
    out = jnp.einsum("bta,ac->btc", yn, p["w_o"], precision=hp)
    return out, (new_wkv, new_shift)


# ----------------------------------------------------------------------------
if __name__ == "__main__":
    # Small config consistent with the module's forward.
    n_embd, dim_att, head_size = 32, 32, 8
    n_head = dim_att // head_size
    n_layer, layer_id = 4, 1
    B, T = 2, 16
    D_MIX, D_DECAY = 32, 64

    key = jax.random.PRNGKey(0)
    ks = jax.random.split(key, 12)

    ratio_0_to_1 = layer_id / (n_layer - 1)
    ratio_1_to_almost0 = 1.0 - layer_id / n_layer
    ddd = (jnp.arange(n_embd, dtype=jnp.float32) / n_embd)[None, None, :]

    narr = jnp.arange(dim_att, dtype=jnp.float32)
    decay_speed = -6.0 + 5.0 * (narr / (dim_att - 1)) ** (0.7 + 1.3 * ratio_0_to_1)
    zigzag = ((narr + 1) % 3 - 1) * 0.1
    lin_s = 1.0 / (n_embd ** 0.5)
    out_s = 1.0 / (dim_att ** 0.5)

    params = dict(
        time_maa_x=1.0 - ddd ** ratio_1_to_almost0,
        time_maa_r=1.0 - ddd ** (0.5 * ratio_1_to_almost0),
        time_maa_k=1.0 - ddd ** ratio_1_to_almost0,
        time_maa_v=1.0 - (ddd ** ratio_1_to_almost0 + 0.3 * ratio_0_to_1),
        time_maa_w=1.0 - ddd ** ratio_1_to_almost0,
        # NOTE: the torch init zeroes the LoRA *_w1 matrices; we use small
        # random values so the LoRA compute paths are actually exercised.
        maa_w1=jax.random.uniform(ks[0], (n_embd, D_MIX * 4), jnp.float32, -0.01, 0.01),
        maa_w2=jax.random.uniform(ks[1], (4, D_MIX, n_embd), jnp.float32, -0.01, 0.01),
        time_decay=decay_speed.reshape(1, 1, dim_att),
        decay_w1=jax.random.uniform(ks[2], (n_embd, D_DECAY), jnp.float32, -0.01, 0.01),
        decay_w2=jax.random.uniform(ks[3], (D_DECAY, dim_att), jnp.float32, -0.01, 0.01),
        time_faaaa=(ratio_0_to_1 * (1 - narr / (dim_att - 1)) + zigzag
                    ).reshape(n_head, head_size),
        w_r=jax.random.uniform(ks[4], (n_embd, dim_att), jnp.float32, -lin_s, lin_s),
        w_k=jax.random.uniform(ks[5], (n_embd, dim_att), jnp.float32, -lin_s, lin_s),
        w_v=jax.random.uniform(ks[6], (n_embd, dim_att), jnp.float32, -lin_s, lin_s),
        w_o=jax.random.uniform(ks[7], (dim_att, n_embd), jnp.float32, -out_s, out_s),
        ln_g=jnp.ones((dim_att,), jnp.float32),
        ln_b=jnp.zeros((dim_att,), jnp.float32),
    )

    x = jax.random.normal(ks[8], (B, T, n_embd), jnp.float32)
    shift0 = jax.random.normal(ks[9], (B, n_embd), jnp.float32)
    wkv0 = 0.1 * jax.random.normal(ks[10], (B, n_head, head_size, head_size), jnp.float32)

    # chunk_len=8 with T=16 -> 2 time-chunks, exercising the state carry.
    y, (new_wkv, new_shift) = tmix_forward_pallas(params, x, shift0, wkv0, chunk_len=8)
    jax.block_until_ready(y)
    jax.block_until_ready(new_wkv)

    y_ref, (wkv_ref, shift_ref) = tmix_forward_ref(params, x, shift0, wkv0)

    assert jnp.allclose(y, y_ref, atol=5e-3, rtol=5e-3), \
        float(jnp.max(jnp.abs(y - y_ref)))
    assert jnp.allclose(new_wkv, wkv_ref, atol=5e-3, rtol=5e-3), \
        float(jnp.max(jnp.abs(new_wkv - wkv_ref)))
    assert jnp.allclose(new_shift, shift_ref)

    print("KERNEL_OK")
</pallas_src>

<mosaic_0001>
module attributes {stable_mosaic.version = 11 : i64} {
  func.func @_mix_proj_kernel(%arg0: i32, %arg1: memref<16x32xf32, #tpu.memory_space<vmem>>, %arg2: memref<16x32xf32, #tpu.memory_space<vmem>>, %arg3: memref<1x32xf32, #tpu.memory_space<vmem>>, %arg4: memref<4x32xf32, #tpu.memory_space<vmem>>, %arg5: memref<32x128xf32, #tpu.memory_space<vmem>>, %arg6: memref<4x32x32xf32, #tpu.memory_space<vmem>>, %arg7: memref<32x32xf32, #tpu.memory_space<vmem>>, %arg8: memref<32x32xf32, #tpu.memory_space<vmem>>, %arg9: memref<32x32xf32, #tpu.memory_space<vmem>>, %arg10: memref<32x64xf32, #tpu.memory_space<vmem>>, %arg11: memref<64x32xf32, #tpu.memory_space<vmem>>, %arg12: memref<1x32xf32, #tpu.memory_space<vmem>>, %arg13: memref<16x32xf32, #tpu.memory_space<vmem>>, %arg14: memref<16x32xf32, #tpu.memory_space<vmem>>, %arg15: memref<16x32xf32, #tpu.memory_space<vmem>>, %arg16: memref<16x32xf32, #tpu.memory_space<vmem>>) attributes {dimension_semantics = [#tpu.dimension_semantics<parallel>], iteration_bounds = array<i64: 2>, scalar_prefetch = 0 : i64, scratch_operands = 0 : i64, tpu.core_type = #tpu.core_type<tc>, window_params = [{transform_indices = @transform_0, window_bounds = array<i64: 16, 32>}, {transform_indices = @transform_1, window_bounds = array<i64: 16, 32>}, {pipeline_mode = #tpu.pipeline_mode<synchronous>, transform_indices = @transform_2, window_bounds = array<i64: 1, 32>}, {pipeline_mode = #tpu.pipeline_mode<synchronous>, transform_indices = @transform_3, window_bounds = array<i64: 4, 32>}, {pipeline_mode = #tpu.pipeline_mode<synchronous>, transform_indices = @transform_4, window_bounds = array<i64: 32, 128>}, {pipeline_mode = #tpu.pipeline_mode<synchronous>, transform_indices = @transform_5, window_bounds = array<i64: 4, 32, 32>}, {pipeline_mode = #tpu.pipeline_mode<synchronous>, transform_indices = @transform_6, window_bounds = array<i64: 32, 32>}, {pipeline_mode = #tpu.pipeline_mode<synchronous>, transform_indices = @transform_7, window_bounds = array<i64: 32, 32>}, {pipeline_mode = #tpu.pipeline_mode<synchronous>, transform_indices = @transform_8, window_bounds = array<i64: 32, 32>}, {pipeline_mode = #tpu.pipeline_mode<synchronous>, transform_indices = @transform_9, window_bounds = array<i64: 32, 64>}, {pipeline_mode = #tpu.pipeline_mode<synchronous>, transform_indices = @transform_10, window_bounds = array<i64: 64, 32>}, {pipeline_mode = #tpu.pipeline_mode<synchronous>, transform_indices = @transform_11, window_bounds = array<i64: 1, 32>}, {transform_indices = @transform_12, window_bounds = array<i64: 16, 32>}, {transform_indices = @transform_13, window_bounds = array<i64: 16, 32>}, {transform_indices = @transform_14, window_bounds = array<i64: 16, 32>}, {transform_indices = @transform_15, window_bounds = array<i64: 16, 32>}]} {
    %c0 = arith.constant 0 : index
    %c0_0 = arith.constant 0 : index
    %0 = vector.load %arg1[%c0, %c0_0] : memref<16x32xf32, #tpu.memory_space<vmem>>, vector<16x32xf32>
    %c0_1 = arith.constant 0 : index
    %c0_2 = arith.constant 0 : index
    %1 = vector.load %arg2[%c0_1, %c0_2] : memref<16x32xf32, #tpu.memory_space<vmem>>, vector<16x32xf32>
    %c0_3 = arith.constant 0 : index
    %c0_4 = arith.constant 0 : index
    %2 = vector.load %arg4[%c0_3, %c0_4] : memref<4x32xf32, #tpu.memory_space<vmem>>, vector<4x32xf32>
    %c0_5 = arith.constant 0 : index
    %c0_6 = arith.constant 0 : index
    %3 = vector.load %arg3[%c0_5, %c0_6] : memref<1x32xf32, #tpu.memory_space<vmem>>, vector<1x32xf32>
    %4 = vector.broadcast %3 : vector<1x32xf32> to vector<16x32xf32>
    %5 = arith.mulf %1, %4 : vector<16x32xf32>
    %6 = arith.addf %0, %5 : vector<16x32xf32>
    %c0_7 = arith.constant 0 : index
    %c0_8 = arith.constant 0 : index
    %7 = vector.load %arg5[%c0_7, %c0_8] : memref<32x128xf32, #tpu.memory_space<vmem>>, vector<32x128xf32>
    %cst = arith.constant dense<0.000000e+00> : vector<16x128xf32>
    %8 = tpu.matmul %6, %7, %cst {dimension_numbers = #tpu.dot_dimension_numbers<[1], [0], [0], [1], [0, 0, 1, 1], [], []>} : vector<16x32xf32>, vector<32x128xf32>, vector<16x128xf32> -> vector<16x128xf32>
    %9 = math.tanh %8 : vector<16x128xf32>
    %10 = vector.extract_strided_slice %9 {offsets = [0, 0], sizes = [16, 32], strides = [1, 1]} : vector<16x128xf32> to vector<16x32xf32>
    %c0_9 = arith.constant 0 : index
    %c0_10 = arith.constant 0 : index
    %c0_11 = arith.constant 0 : index
    %11 = vector.load %arg6[%c0_9, %c0_10, %c0_11] : memref<4x32x32xf32, #tpu.memory_space<vmem>>, vector<1x32x32xf32>
    %12 = vector.shape_cast %11 : vector<1x32x32xf32> to vector<32x32xf32>
    %cst_12 = arith.constant dense<0.000000e+00> : vector<16x32xf32>
    %13 = tpu.matmul %10, %12, %cst_12 {dimension_numbers = #tpu.dot_dimension_numbers<[1], [0], [0], [1], [0, 0, 1, 1], [], []>} : vector<16x32xf32>, vector<32x32xf32>, vector<16x32xf32> -> vector<16x32xf32>
    %14 = vector.extract_strided_slice %2 {offsets = [0, 0], sizes = [1, 32], strides = [1, 1]} : vector<4x32xf32> to vector<1x32xf32>
    %15 = vector.broadcast %14 : vector<1x32xf32> to vector<16x32xf32>
    %16 = arith.addf %15, %13 : vector<16x32xf32>
    %17 = arith.mulf %1, %16 : vector<16x32xf32>
    %18 = arith.addf %0, %17 : vector<16x32xf32>
    %19 = vector.extract_strided_slice %9 {offsets = [0, 32], sizes = [16, 32], strides = [1, 1]} : vector<16x128xf32> to vector<16x32xf32>
    %c1 = arith.constant 1 : index
    %c0_13 = arith.constant 0 : index
    %c0_14 = arith.constant 0 : index
    %20 = vector.load %arg6[%c1, %c0_13, %c0_14] : memref<4x32x32xf32, #tpu.memory_space<vmem>>, vector<1x32x32xf32>
    %21 = vector.shape_cast %20 : vector<1x32x32xf32> to vector<32x32xf32>
    %cst_15 = arith.constant dense<0.000000e+00> : vector<16x32xf32>
    %22 = tpu.matmul %19, %21, %cst_15 {dimension_numbers = #tpu.dot_dimension_numbers<[1], [0], [0], [1], [0, 0, 1, 1], [], []>} : vector<16x32xf32>, vector<32x32xf32>, vector<16x32xf32> -> vector<16x32xf32>
    %23 = vector.extract_strided_slice %2 {offsets = [1, 0], sizes = [1, 32], strides = [1, 1]} : vector<4x32xf32> to vector<1x32xf32>
    %24 = vector.broadcast %23 : vector<1x32xf32> to vector<16x32xf32>
    %25 = arith.addf %24, %22 : vector<16x32xf32>
    %26 = arith.mulf %1, %25 : vector<16x32xf32>
    %27 = arith.addf %0, %26 : vector<16x32xf32>
    %28 = vector.extract_strided_slice %9 {offsets = [0, 64], sizes = [16, 32], strides = [1, 1]} : vector<16x128xf32> to vector<16x32xf32>
    %c2 = arith.constant 2 : index
    %c0_16 = arith.constant 0 : index
    %c0_17 = arith.constant 0 : index
    %29 = vector.load %arg6[%c2, %c0_16, %c0_17] : memref<4x32x32xf32, #tpu.memory_space<vmem>>, vector<1x32x32xf32>
    %30 = vector.shape_cast %29 : vector<1x32x32xf32> to vector<32x32xf32>
    %cst_18 = arith.constant dense<0.000000e+00> : vector<16x32xf32>
    %31 = tpu.matmul %28, %30, %cst_18 {dimension_numbers = #tpu.dot_dimension_numbers<[1], [0], [0], [1], [0, 0, 1, 1], [], []>} : vector<16x32xf32>, vector<32x32xf32>, vector<16x32xf32> -> vector<16x32xf32>
    %32 = vector.extract_strided_slice %2 {offsets = [2, 0], sizes = [1, 32], strides = [1, 1]} : vector<4x32xf32> to vector<1x32xf32>
    %33 = vector.broadcast %32 : vector<1x32xf32> to vector<16x32xf32>
    %34 = arith.addf %33, %31 : vector<16x32xf32>
    %35 = arith.mulf %1, %34 : vector<16x32xf32>
    %36 = arith.addf %0, %35 : vector<16x32xf32>
    %37 = vector.extract_strided_slice %9 {offsets = [0, 96], sizes = [16, 32], strides = [1, 1]} : vector<16x128xf32> to vector<16x32xf32>
    %c3 = arith.constant 3 : index
    %c0_19 = arith.constant 0 : index
    %c0_20 = arith.constant 0 : index
    %38 = vector.load %arg6[%c3, %c0_19, %c0_20] : memref<4x32x32xf32, #tpu.memory_space<vmem>>, vector<1x32x32xf32>
    %39 = vector.shape_cast %38 : vector<1x32x32xf32> to vector<32x32xf32>
    %cst_21 = arith.constant dense<0.000000e+00> : vector<16x32xf32>
    %40 = tpu.matmul %37, %39, %cst_21 {dimension_numbers = #tpu.dot_dimension_numbers<[1], [0], [0], [1], [0, 0, 1, 1], [], []>} : vector<16x32xf32>, vector<32x32xf32>, vector<16x32xf32> -> vector<16x32xf32>
    %41 = vector.extract_strided_slice %2 {offsets = [3, 0], sizes = [1, 32], strides = [1, 1]} : vector<4x32xf32> to vector<1x32xf32>
    %42 = vector.broadcast %41 : vector<1x32xf32> to vector<16x32xf32>
    %43 = arith.addf %42, %40 : vector<16x32xf32>
    %44 = arith.mulf %1, %43 : vector<16x32xf32>
    %45 = arith.addf %0, %44 : vector<16x32xf32>
    %c0_22 = arith.constant 0 : index
    %c0_23 = arith.constant 0 : index
    %46 = vector.load %arg7[%c0_22, %c0_23] : memref<32x32xf32, #tpu.memory_space<vmem>>, vector<32x32xf32>
    %cst_24 = arith.constant dense<0.000000e+00> : vector<16x32xf32>
    %47 = tpu.matmul %18, %46, %cst_24 {dimension_numbers = #tpu.dot_dimension_numbers<[1], [0], [0], [1], [0, 0, 1, 1], [], []>} : vector<16x32xf32>, vector<32x32xf32>, vector<16x32xf32> -> vector<16x32xf32>
    %c0_25 = arith.constant 0 : index
    %c0_26 = arith.constant 0 : index
    %48 = vector.load %arg13[%c0_25, %c0_26] : memref<16x32xf32, #tpu.memory_space<vmem>>, vector<16x32xf32>
    tpu.vector_store %arg13[%c0_25, %c0_26], %47 {strides = array<i32>} : memref<16x32xf32, #tpu.memory_space<vmem>>, vector<16x32xf32>,
    %c0_27 = arith.constant 0 : index
    %c0_28 = arith.constant 0 : index
    %49 = vector.load %arg8[%c0_27, %c0_28] : memref<32x32xf32, #tpu.memory_space<vmem>>, vector<32x32xf32>
    %cst_29 = arith.constant dense<0.000000e+00> : vector<16x32xf32>
    %50 = tpu.matmul %27, %49, %cst_29 {dimension_numbers = #tpu.dot_dimension_numbers<[1], [0], [0], [1], [0, 0, 1, 1], [], []>} : vector<16x32xf32>, vector<32x32xf32>, vector<16x32xf32> -> vector<16x32xf32>
    %c0_30 = arith.constant 0 : index
    %c0_31 = arith.constant 0 : index
    %51 = vector.load %arg14[%c0_30, %c0_31] : memref<16x32xf32, #tpu.memory_space<vmem>>, vector<16x32xf32>
    tpu.vector_store %arg14[%c0_30, %c0_31], %50 {strides = array<i32>} : memref<16x32xf32, #tpu.memory_space<vmem>>, vector<16x32xf32>,
    %c0_32 = arith.constant 0 : index
    %c0_33 = arith.constant 0 : index
    %52 = vector.load %arg9[%c0_32, %c0_33] : memref<32x32xf32, #tpu.memory_space<vmem>>, vector<32x32xf32>
    %cst_34 = arith.constant dense<0.000000e+00> : vector<16x32xf32>
    %53 = tpu.matmul %36, %52, %cst_34 {dimension_numbers = #tpu.dot_dimension_numbers<[1], [0], [0], [1], [0, 0, 1, 1], [], []>} : vector<16x32xf32>, vector<32x32xf32>, vector<16x32xf32> -> vector<16x32xf32>
    %c0_35 = arith.constant 0 : index
    %c0_36 = arith.constant 0 : index
    %54 = vector.load %arg15[%c0_35, %c0_36] : memref<16x32xf32, #tpu.memory_space<vmem>>, vector<16x32xf32>
    tpu.vector_store %arg15[%c0_35, %c0_36], %53 {strides = array<i32>} : memref<16x32xf32, #tpu.memory_space<vmem>>, vector<16x32xf32>,
    %c0_37 = arith.constant 0 : index
    %c0_38 = arith.constant 0 : index
    %55 = vector.load %arg12[%c0_37, %c0_38] : memref<1x32xf32, #tpu.memory_space<vmem>>, vector<1x32xf32>
    %c0_39 = arith.constant 0 : index
    %c0_40 = arith.constant 0 : index
    %56 = vector.load %arg10[%c0_39, %c0_40] : memref<32x64xf32, #tpu.memory_space<vmem>>, vector<32x64xf32>
    %cst_41 = arith.constant dense<0.000000e+00> : vector<16x64xf32>
    %57 = tpu.matmul %45, %56, %cst_41 {dimension_numbers = #tpu.dot_dimension_numbers<[1], [0], [0], [1], [0, 0, 1, 1], [], []>} : vector<16x32xf32>, vector<32x64xf32>, vector<16x64xf32> -> vector<16x64xf32>
    %58 = math.tanh %57 : vector<16x64xf32>
    %c0_42 = arith.constant 0 : index
    %c0_43 = arith.constant 0 : index
    %59 = vector.load %arg11[%c0_42, %c0_43] : memref<64x32xf32, #tpu.memory_space<vmem>>, vector<64x32xf32>
    %cst_44 = arith.constant dense<0.000000e+00> : vector<16x32xf32>
    %60 = tpu.matmul %58, %59, %cst_44 {dimension_numbers = #tpu.dot_dimension_numbers<[1], [0], [0], [1], [0, 0, 1, 1], [], []>} : vector<16x64xf32>, vector<64x32xf32>, vector<16x32xf32> -> vector<16x32xf32>
    %61 = vector.broadcast %55 : vector<1x32xf32> to vector<16x32xf32>
    %62 = arith.addf %61, %60 : vector<16x32xf32>
    %c0_45 = arith.constant 0 : index
    %c0_46 = arith.constant 0 : index
    %63 = vector.load %arg16[%c0_45, %c0_46] : memref<16x32xf32, #tpu.memory_space<vmem>>, vector<16x32xf32>
    tpu.vector_store %arg16[%c0_45, %c0_46], %62 {strides = array<i32>} : memref<16x32xf32, #tpu.memory_space<vmem>>, vector<16x32xf32>,
    return
  }
  func.func @transform_0(%arg0: i32) -> (i32, i32) {
    %c0_i32 = arith.constant 0 : i32
    %c0_i32_0 = arith.constant 0 : i32
    return %arg0, %c0_i32 : i32, i32
  }
  func.func @transform_1(%arg0: i32) -> (i32, i32) {
    %c0_i32 = arith.constant 0 : i32
    %c0_i32_0 = arith.constant 0 : i32
    return %arg0, %c0_i32 : i32, i32
  }
  func.func @transform_2(%arg0: i32) -> (i32, i32) {
    %c0_i32 = arith.constant 0 : i32
    %c0_i32_0 = arith.constant 0 : i32
    %c0_i32_1 = arith.constant 0 : i32
    return %c0_i32, %c0_i32_0 : i32, i32
  }
  func.func @transform_3(%arg0: i32) -> (i32, i32) {
    %c0_i32 = arith.constant 0 : i32
    %c0_i32_0 = arith.constant 0 : i32
    %c0_i32_1 = arith.constant 0 : i32
    return %c0_i32, %c0_i32_0 : i32, i32
  }
  func.func @transform_4(%arg0: i32) -> (i32, i32) {
    %c0_i32 = arith.constant 0 : i32
    %c0_i32_0 = arith.constant 0 : i32
    %c0_i32_1 = arith.constant 0 : i32
    return %c0_i32, %c0_i32_0 : i32, i32
  }
  func.func @transform_5(%arg0: i32) -> (i32, i32, i32) {
    %c0_i32 = arith.constant 0 : i32
    %c0_i32_0 = arith.constant 0 : i32
    %c0_i32_1 = arith.constant 0 : i32
    %c0_i32_2 = arith.constant 0 : i32
    return %c0_i32, %c0_i32_0, %c0_i32_1 : i32, i32, i32
  }
  func.func @transform_6(%arg0: i32) -> (i32, i32) {
    %c0_i32 = arith.constant 0 : i32
    %c0_i32_0 = arith.constant 0 : i32
    %c0_i32_1 = arith.constant 0 : i32
    return %c0_i32, %c0_i32_0 : i32, i32
  }
  func.func @transform_7(%arg0: i32) -> (i32, i32) {
    %c0_i32 = arith.constant 0 : i32
    %c0_i32_0 = arith.constant 0 : i32
    %c0_i32_1 = arith.constant 0 : i32
    return %c0_i32, %c0_i32_0 : i32, i32
  }
  func.func @transform_8(%arg0: i32) -> (i32, i32) {
    %c0_i32 = arith.constant 0 : i32
    %c0_i32_0 = arith.constant 0 : i32
    %c0_i32_1 = arith.constant 0 : i32
    return %c0_i32, %c0_i32_0 : i32, i32
  }
  func.func @transform_9(%arg0: i32) -> (i32, i32) {
    %c0_i32 = arith.constant 0 : i32
    %c0_i32_0 = arith.constant 0 : i32
    %c0_i32_1 = arith.constant 0 : i32
    return %c0_i32, %c0_i32_0 : i32, i32
  }
  func.func @transform_10(%arg0: i32) -> (i32, i32) {
    %c0_i32 = arith.constant 0 : i32
    %c0_i32_0 = arith.constant 0 : i32
    %c0_i32_1 = arith.constant 0 : i32
    return %c0_i32, %c0_i32_0 : i32, i32
  }
  func.func @transform_11(%arg0: i32) -> (i32, i32) {
    %c0_i32 = arith.constant 0 : i32
    %c0_i32_0 = arith.constant 0 : i32
    %c0_i32_1 = arith.constant 0 : i32
    return %c0_i32, %c0_i32_0 : i32, i32
  }
  func.func @transform_12(%arg0: i32) -> (i32, i32) {
    %c0_i32 = arith.constant 0 : i32
    %c0_i32_0 = arith.constant 0 : i32
    return %arg0, %c0_i32 : i32, i32
  }
  func.func @transform_13(%arg0: i32) -> (i32, i32) {
    %c0_i32 = arith.constant 0 : i32
    %c0_i32_0 = arith.constant 0 : i32
    return %arg0, %c0_i32 : i32, i32
  }
  func.func @transform_14(%arg0: i32) -> (i32, i32) {
    %c0_i32 = arith.constant 0 : i32
    %c0_i32_0 = arith.constant 0 : i32
    return %arg0, %c0_i32 : i32, i32
  }
  func.func @transform_15(%arg0: i32) -> (i32, i32) {
    %c0_i32 = arith.constant 0 : i32
    %c0_i32_0 = arith.constant 0 : i32
    return %arg0, %c0_i32 : i32, i32
  }
}

</mosaic_0001>

<bundles_post_ra>
// kernel: tpu_custom_call.1
= control target key start
LH: loop header
LB: loop body
LE: loop exit
PB: predicated region body
PF: predicated region fallthrough
CT: control target
= control target key end

     0   :  { %s3009_s0 = inlined_call_operand.vmem [shape: f32[32,32], index: 0, kind: input, shape index: {}]   ;;  %s3010_s1 = inlined_call_operand.vmem [shape: f32[32,32], index: 1, kind: input, shape index: {}]   ;;  %s3011_s2 = inlined_call_operand.vmem [shape: f32[1,32], index: 2, kind: input, shape index: {}]   ;;  %s3012_s3 = inlined_call_operand.vmem [shape: f32[4,32], index: 3, kind: input, shape index: {}]   ;;  %s3013_s4 = inlined_call_operand.vmem [shape: f32[32,128], index: 4, kind: input, shape index: {}]   ;;  %s3014_s5 = inlined_call_operand.hbm [shape: f32[4,32,32], index: 5, kind: input, shape index: {}]   ;;  %s3015_s6 = inlined_call_operand.hbm [shape: f32[32,32], index: 6, kind: input, shape index: {}]   ;;  %s3016_s7 = inlined_call_operand.hbm [shape: f32[32,32], index: 7, kind: input, shape index: {}]   ;;  %s3017_s8 = inlined_call_operand.hbm [shape: f32[32,32], index: 8, kind: input, shape index: {}]   ;;  %s3018_s9 = inlined_call_operand.hbm [shape: f32[32,64], index: 9, kind: input, shape index: {}]   ;;  %s3019_s10 = inlined_call_operand.vmem [shape: f32[64,32], index: 10, kind: input, shape index: {}]   ;;  %s3020_s11 = inlined_call_operand.vmem [shape: f32[1,32], index: 11, kind: input, shape index: {}]   ;;  %s3021_s12 = inlined_call_operand.hbm [shape: f32[32,32], index: 12, kind: output, shape index: {0}]   ;;  %s3022_s13 = inlined_call_operand.hbm [shape: f32[32,32], index: 13, kind: output, shape index: {1}]   ;;  %s3023_s14 = inlined_call_operand.hbm [shape: f32[32,32], index: 14, kind: output, shape index: {2}]   ;;  %s3024_s15 = inlined_call_operand.hbm [shape: f32[32,32], index: 15, kind: output, shape index: {3}]  }
   0x1   :  { %3037 = sst [smem:[#allocation29_spill]] %s3009_s0 }
   0x2   :  { %3038 = sst [smem:[#allocation30_spill]] %s3010_s1 }
   0x3   :  { %3039 = sst [smem:[#allocation31_spill]] %s3011_s2 }
   0x4   :  { %3040 = sst [smem:[#allocation32_spill]] %s3015_s6 }
   0x5   :  { %3041 = sst [smem:[#allocation33_spill]] %s3024_s15 }
   0x6   :  { %21 = vsyncpa [#allocation3], 0 }
   0x7   :  { %22 = vsyncpa [#allocation6], 0 }
   0x8   :  { %23 = vsyncpa [#allocation9], 0 }
   0x9   :  { %24 = vsyncpa [#allocation4], 0 }
   0xa   :  { %26 = vsyncpa [#allocation4 + $0x1], 0 }
   0xb   :  { %27 = vsyncpa [#allocation13], 0 }
   0xc   :  { %29 = vsyncpa [#allocation13 + $0x1], 0 }
   0xd   :  { %30 = vsyncpa [#allocation16], 0 }
   0xe   :  { %32 = vsyncpa [#allocation16 + $0x1], 0  ;;  %s2608_s18 = smov 0   ;;  %s2610_s19 = smov 0  }
   0xf   :  { %s2612_s20 = smov 0   ;;  %s2614_s21 = smov 0  }
  0x10 LB: > { %3042 = sst [smem:[#allocation23_spill]] %s2498_s18  ;;  %s2629_s22 = sadd.s32 4294967295, %s2510_s21   ;;  %s2510_s21 = sphi %s2614_s21, %s3069_s21   ;;  %s2506_s20 = sphi %s2612_s20, %s3071_s20   ;;  %s2502_s19 = sphi %s2610_s19, %s3073_s19   ;;  %s2498_s18 = sphi %s2608_s18, %s3072_s18  }
  0x11   : > { %3043 = sst [smem:[#allocation24_spill]] %s2506_s20  ;;  %s3025_s23 = sadd.s32 4294967294, %s2510_s21  }
  0x12   : > { %3044 = sst [smem:[#allocation25_spill]] %s2510_s21  ;;  %s2633_s24 = sadd.s32 1, %s2510_s21  }
  0x13   : > { %3045 = sst [smem:[#allocation26_spill]] %s2633_s24  ;;  %s307_s25 = sadd.s32 1, %s2506_s20 }
  0x14   : > { %s304_s26 = ssub.s32 %s2510_s21, %s2633_s24  ;;  %p317_p0 = scmp.ne.s32.totalorder %s2506_s20, %s2502_s19 }
  0x15   : > { %p305_p1 = scmp.eq.s32.totalorder %s304_s26, 0  ;;  %p318_p2 = scmp.eq.s32.totalorder %s2629_s22, 1 }
  0x16   : > { %p323_p3 = scmp.ne.s32.totalorder %s2502_s19, %s2498_s18  ;;  %p324_p4 = scmp.eq.s32.totalorder %s3025_s23, 1 }
  0x17   : > { %s2646_s27 = scalar_select %p305_p1, %s2506_s20, %s307_s25  }
  0x18   : > { %p2648_p5 = por %p318_p2, %p317_p0  ;;  %p2652_p6 = por %p324_p4, %p323_p3 }
  0x19   : > { %3046 = sst [smem:[#allocation27_spill]] %s2646_s27  ;;  %p1859_p7 = scmp.ge.s32.totalorder %s2510_s21, 1 }
  0x1a   : > { %s3048_s29 = scalar_select %p2652_p6, 1, 0 }
  0x1b   : > { %p409_p8 = scmp.lt.s32.totalorder %s2510_s21, 3  ;;  %p3034_p9 = scmp.eq.s32.totalorder %s2629_s22, 0 }
  0x1c   : > { %3049 = sst [smem:[#allocation28_spill]] %s3048_s29  ;;  %s2512_s16 = smov [#allocation5]  }
  0x1d   : > { %p2659_p10 = pnand %p1859_p7, %p409_p8  ;;  %s443_s17 = sshll.u32 %s2512_s16, 4  ;;  %s444_s17 = int_to_ptr.vmem [resolvable:$true] %s443_s17 }
  0x1e   : > { %s2513_s26 = smov [#allocation8]   ;;  %s2514_s27 = smov [#allocation2]  }
  0x1f   : > { %p2130_p11 = pneg %p2659_p10  ;;  %s469_s23 = sshll.u32 %s2513_s26, 4  ;;  %s470_s23 = int_to_ptr.vmem [resolvable:$true] %s469_s23 }
  0x20   : > { %s430_s20 = sshll.u32 %s2514_s27, 4  ;;  %s2233_s29 = scalar_lea.vmem %s444_s17, 512  ;;  %s431_s20 = int_to_ptr.vmem [resolvable:$true] %s430_s20 }
  0x21   : > { %p2667_p12 = pnand %p3034_p9, %p2130_p11  ;;  %p2234_p0 = scmp.ne.s32.totalorder %s444_s17, %s2233_s29 }
  0x22   : > { %p2241_p3 = scmp.lt.s32.totalorder %s444_s17, %s444_s17  ;;  %p2242_p4 = scmp.lt.s32.totalorder %s2233_s29, %s2233_s29 }
  0x23   : > { %p2673_p13 = pneg %p2667_p12 }
  0x24   : > { %p2243_p7 = por %p2242_p4, %p2241_p3 }
  0x25   : > { %p2236_p1 = pnand %p2234_p0, %p2673_p13 }
  0x27   : > { %p2237_p2 = pneg %p2236_p1 }
  0x29   : > { %p2244_p8 = pnand %p2243_p7, %p2237_p2 }
  0x2b   : > { %2247 = shalt.err (!%p2244_p8)
}
  0x2c   : > { %s2515_s16 = smov 128   ;;  %s2516_s27 = smov 8  }
  0x2d   : > { %s3053_s6 = sld [smem:[#allocation32_spill]]  ;;  %s2259_s21 = scalar_lea.vmem %s470_s23, 512 }
  0x2e   : > { %p2260_p11 = scmp.ne.s32.totalorder %s470_s23, %s2259_s21  ;;  %p2267_p3 = scmp.lt.s32.totalorder %s470_s23, %s470_s23 }
  0x2f   : > { %p2268_p2 = scmp.lt.s32.totalorder %s2259_s21, %s2259_s21 }
  0x30   : > { %p2262_p0 = pnand %p2260_p11, %p2673_p13 }
  0x31   : > { %p2269_p4 = por %p2268_p2, %p2267_p3 }
  0x32   : > { %p2263_p1 = pneg %p2262_p0 }
  0x33   : > { %2136 = dma.hbm_to_vmem [thread:$0]  (!%p2667_p12), %s3053_s6, 512, %s444_s17, [#allocation6], %s2515_s16, %s2515_s16, %s2516_s27  }
  0x34   : > { %p2270_p7 = pnand %p2269_p4, %p2263_p1 }
  0x36   : > { %2273 = shalt.err (!%p2270_p7)
}
  0x37   : > { %2142 = dma.hbm_to_vmem [thread:$0]  (!%p2667_p12), %s3017_s8, 512, %s470_s23, [#allocation9], %s2515_s16, %s2515_s16, %s2516_s27  }
  0x38   : > { %s2285_s18 = scalar_lea.vmem %s431_s20, 2048  ;;  %p2293_p9 = scmp.lt.s32.totalorder %s431_s20, %s431_s20 }
  0x39   : > { %p2286_p8 = scmp.ne.s32.totalorder %s431_s20, %s2285_s18  ;;  %p2294_p3 = scmp.lt.s32.totalorder %s2285_s18, %s2285_s18 }
  0x3b   : > { %p2288_p11 = pnand %p2286_p8, %p2673_p13  ;;  %p2295_p1 = por %p2294_p3, %p2293_p9 }
  0x3d   : > { %p2289_p0 = pneg %p2288_p11 }
  0x3f   : > { %p2296_p2 = pnand %p2295_p1, %p2289_p0 }
  0x41   : > { %2299 = shalt.err (!%p2296_p2)
}
  0x42   : > { %2133 = dma.hbm_to_vmem [thread:$0]  (!%p2667_p12), %s3014_s5, 2048, %s431_s20, [#allocation3], %s2515_s16, %s2515_s16, %s2516_s27  }
  0x43   : > { %s2517_s23 = smov [#allocation7]   ;;  %s2518_s26 = smov [#allocation10]  }
  0x44   : > { %s456_s17 = sshll.u32 %s2517_s23, 4  ;;  %s482_s29 = sshll.u32 %s2518_s26, 4  ;;  %s457_s17 = int_to_ptr.vmem [resolvable:$true] %s456_s17  ;;  %s483_s29 = int_to_ptr.vmem [resolvable:$true] %s482_s29 }
  0x45   : > { %s2311_s6 = scalar_lea.vmem %s457_s17, 512  ;;  %p2319_p8 = scmp.lt.s32.totalorder %s457_s17, %s457_s17 }
  0x46   : > { %p2312_p4 = scmp.ne.s32.totalorder %s457_s17, %s2311_s6  ;;  %p2320_p11 = scmp.lt.s32.totalorder %s2311_s6, %s2311_s6 }
  0x48   : > { %p2314_p9 = pnand %p2312_p4, %p2673_p13  ;;  %p2321_p0 = por %p2320_p11, %p2319_p8 }
  0x4a   : > { %p2315_p7 = pneg %p2314_p9 }
  0x4c   : > { %p2322_p3 = pnand %p2321_p0, %p2315_p7 }
  0x4e   : > { %2325 = shalt.err (!%p2322_p3)
}
  0x4f   : > { %2139 = dma.hbm_to_vmem [thread:$0]  (!%p2667_p12), %s3016_s7, 512, %s457_s17, [#allocation6], %s2515_s16, %s2515_s16, %s2516_s27  }
  0x50   : > { %s2337_s21 = scalar_lea.vmem %s483_s29, 512  ;;  %p2345_p9 = scmp.lt.s32.totalorder %s483_s29, %s483_s29 }
  0x51   : > { %p2338_p1 = scmp.ne.s32.totalorder %s483_s29, %s2337_s21  ;;  %p2346_p8 = scmp.lt.s32.totalorder %s2337_s21, %s2337_s21 }
  0x53   : > { %p2340_p2 = pnand %p2338_p1, %p2673_p13  ;;  %p2347_p7 = por %p2346_p8, %p2345_p9 }
  0x55   : > { %p2341_p4 = pneg %p2340_p2 }
  0x57   : > { %p2348_p11 = pnand %p2347_p7, %p2341_p4 }
  0x59   : > { %2351 = shalt.err (!%p2348_p11)
}
  0x5a   : > { %2145 = dma.hbm_to_vmem [thread:$0]  (!%p2667_p12), %s3018_s9, 512, %s483_s29, [#allocation9], %s2515_s16, %s2515_s16, %s2516_s27  }
  0x5b   : > { %522 = sbr.rel (%p2659_p10) target bundleno = 1077 (0x435), region = 68  ;;  %p3054_p13 = scmp.eq.s32.totalorder (!%p2659_p10), %s2629_s22, 0 }
  0x60   : > { %2473 = dma.done.wait (%p3054_p13), [#allocation3], 2048   ;;  %p3055_p0 = pmov %p3054_p13 }
  0x62   : > { %2475 = vsyncadd (%p3055_p0), [#allocation3], 4294965248  ;;  %p3056_p3 = pmov %p3055_p0 }
  0x63   : > { %p3057_p1 = pmov %p3055_p0 }
  0x64   : > { %2477 = dma.done.wait (%p3056_p3), [#allocation6], 1024  }
  0x65   : > { %2479 = vsyncadd (%p3057_p1), [#allocation6], 4294966272  ;;  %p3058_p2 = pmov %p3055_p0 }
  0x66   : > { %p3059_p12 = pmov %p3055_p0 }
  0x67   : > { %2481 = dma.done.wait (%p3058_p2), [#allocation9], 1024  }
  0x68   : > { %2483 = vsyncadd (%p3059_p12), [#allocation9], 4294966272  ;;  %s1876_s24 = sshll.u32 %s2629_s22, 1  ;;  %s3060_s0 = sld [smem:[#allocation29_spill]]  ;;  %v641_v0 = vld [vmem:[%s3013_s4 + $0x18] sm:$0xff]  ;;  %v640_v1 = vld [vmem:[%s3013_s4 + $0x10] sm:$0xff]  ;;  %v811_v43 = vlaneseq }
  0x69   : > { %p607_p10 = scmp.lt.s32.totalorder %s1876_s24, 3  ;;  %s3061_s1 = sld [smem:[#allocation30_spill]]  ;;  %1984 = vmatprep.subr.mxu0 %v641_v0  ;;  %v639_v2 = vld [vmem:[%s3013_s4 + $0x8] sm:$0xff]  ;;  %v638_v10 = vld [vmem:[%s3013_s4] sm:$0xff]  ;;  %vm642_vm0 = vcmask 261120   ;;  %v729_v13 = vld [vmem:[#allocation2 + $0x18] sm:$0xff] }
  0x6a   : > { %1985 = vmatpush3.msra.mxu0 %v641_v0  ;;  %s3062_s2 = sld [smem:[#allocation31_spill]]  ;;  %v728_v14 = vld [vmem:[#allocation2 + $0x10] sm:$0xff]  ;;  %1995 = vmatprep.subr.mxu1 %v729_v13  ;;  %v727_v15 = vld [vmem:[#allocation2 + $0x8] sm:$0xff]  ;;  %v726_v16 = vld [vmem:[#allocation2] sm:$0xff]  ;;  %s2520_s23 = smov 96   ;;  %v812_v44 = vshrl.u32 %v811_v43, 7 }
  0x6b   : > { %s3075_s24 = smov (!%p607_p10, %s1876_s24), 3  ;;  %1986 = vmatprep.subr.mxu0 %v640_v1  ;;  %1996 = vmatpush3.msra.mxu1 %v729_v13  ;;  %v825_v17 = vld [vmem:[#allocation2 + $0x38] sm:$0xff]  ;;  %v824_v18 = vld [vmem:[#allocation2 + $0x30] sm:$0xff]  ;;  %v823_v19 = vld [vmem:[#allocation2 + $0x28] sm:$0xff]  ;;  %s2521_s17 = smov 64   ;;  %vm1472_vm1 = vcmask 523264  }
  0x6c   : > { %s1877_s30 = sshll.u32 %s3075_s24, 3  ;;  %1987 = vmatpush3.msra.mxu0 %v640_v1  ;;  %1997 = vmatprep.subr.mxu1 %v728_v14  ;;  %v822_v22 = vld [vmem:[#allocation2 + $0x20] sm:$0xff]  ;;  %v923_v23 = vld [vmem:[#allocation2 + $0x58] sm:$0xff]  ;;  %v922_v27 = vld [vmem:[#allocation2 + $0x50] sm:$0xff]  ;;  %v813_v47 = vsub.s32 0, %v812_v44  ;;  %v911_v1 = vsub.s32 1, %v812_v44 }
  0x6d   : > { %1988 = vmatprep.subr.mxu0 %v639_v2  ;;  %1998 = vmatpush3.msra.mxu1 %v728_v14  ;;  %v1021_v24 = vld [vmem:[#allocation2 + $0x78] sm:$0xff]  ;;  %v921_v28 = vld [vmem:[#allocation2 + $0x48] sm:$0xff]  ;;  %v920_v29 = vld [vmem:[#allocation2 + $0x40] sm:$0xff]  ;;  %s2813_s20 = sand.u32 1, %s2502_s19   ;;  %s1569_s29 = sand.u32 1, %s2629_s22  }
  0x6e   : > { %s610_s27 = scalar_lea.vmem %s3060_s0, %s1877_s30  ;;  %1989 = vmatpush3.msra.mxu0 %v639_v2  ;;  %1999 = vmatprep.subr.mxu1 %v727_v15  ;;  %v1118_v30 = vld [vmem:[#allocation5 + $0x18] sm:$0xff]  ;;  %v1020_v35 = vld [vmem:[#allocation2 + $0x70] sm:$0xff]  ;;  %v1019_v36 = vld [vmem:[#allocation2 + $0x68] sm:$0xff]  ;;  %s2816_s18 = sshll.u32 %s2813_s20, 4 }
  0x6f   : > { %s616_s26 = scalar_lea.vmem %s3061_s1, %s1877_s30  ;;  %v2757_v3 = vld [vmem:[%s610_s27] sm:$0xff]  ;;  %v2759_v4 = vld [vmem:[%s610_s27 + $0x8] sm:$0xff]  ;;  %1990 = vmatprep.subr.mxu0 %v638_v10  ;;  %2000 = vmatpush3.msra.mxu1 %v727_v15  ;;  %s2519_s27 = smov 32   ;;  %v1117_v40 = vld [vmem:[#allocation5 + $0x10] sm:$0xff] }
  0x70   : > { %v2761_v5 = vld [vmem:[%s616_s26] sm:$0xff]  ;;  %v2763_v6 = vld [vmem:[%s616_s26 + $0x8] sm:$0xff]  ;;  %1991 = vmatpush3.msra.mxu0 %v638_v10  ;;  %2001 = vmatprep.subr.mxu1 %v726_v16  ;;  %v1205_v45 = vld [vmem:[#allocation7 + $0x18] sm:$0xff]  ;;  %v1107_v10 = vsub.s32 3, %v812_v44  ;;  %s2828_s16 = scalar_lea.vmem [#allocation11], %s2816_s18  ;;  %s591_s25 = scalar_lea.vmem [#allocation12], %s2816_s18 }
  0x71   : > { %v1880_v7 = vld [vmem:[%s3062_s2] ss:$0 sm:$0xff]  ;;  %2002 = vmatpush3.msra.mxu1 %v726_v16  ;;  %2006 = vmatprep.subr.mxu0 %v825_v17  ;;  %v1116_v41 = vld [vmem:[#allocation5 + $0x8] sm:$0xff]  ;;  %v1204_v46 = vld [vmem:[#allocation7 + $0x10] sm:$0xff]  ;;  %s2864_s21 = sshll.u32 %s2629_s22, 8 }
  0x72   : > { %v634_v8 = vmul.f32 %v1880_v7, %v2761_v5  ;;  %v635_v9 = vmul.f32 %v1880_v7, %v2763_v6  ;;  %2017 = vmatprep.subr.mxu1 %v923_v23  ;;  %v1018_v39 = vld [vmem:[#allocation2 + $0x60] sm:$0xff]  ;;  %v1203_v49 = vld [vmem:[#allocation7 + $0x8] sm:$0xff]  ;;  %v1292_v51 = vld [vmem:[#allocation8 + $0x18] sm:$0xff]  ;;  %v1009_v7 = vsub.s32 2, %v812_v44  ;;  %s2870_s24 = scalar_lea.hbm %s3022_s13, %s2864_s21 }
  0x73   : > { %v1115_v42 = vld [vmem:[#allocation5] sm:$0xff]  ;;  %v1380_v53 = vld [vmem:[#allocation10 + $0x18] sm:$0xff]  ;;  %v1291_v62 = vld [vmem:[#allocation8 + $0x10] sm:$0xff] }
  0x74   : > { %v636_v11 = vadd.f32 %v634_v8, %v2757_v3  ;;  %v637_v12 = vadd.f32 %v635_v9, %v2759_v4  ;;  %v626_v48 = vld [vmem:[%s3012_s3] sm:$0xf]  ;;  %v1290_v63 = vld [vmem:[#allocation8 + $0x8] sm:$0xff] }
  0x75   : > { %v1202_v50 = vld [vmem:[#allocation7] sm:$0xff]  ;;  %v814_v52 = vrot.slane %v626_v48, %v813_v47  ;;  %v912_v2 = vrot.slane %v626_v48, %v911_v1 }
  0x76   : > { %1992 = vmatprep.mubr.msk.f32.mxu0 %vm642_vm0, %v636_v11  ;;  %v1289_v0 = vld [vmem:[#allocation8] sm:$0xff] }
  0x77   : > { %1993 = vmatmul.mubr.msk.f32.vlgmr.msra.gmra.mxu0 %vm642_vm0, %v637_v12  ;;  %v1010_v12 = vrot.slane %v626_v48, %v1009_v7  ;;  %v1464_v43 = vld [vmem:[%s3019_s10] sm:$0xff] }
  0x78   : > { %2007 = vmatpush3.msra.mxu0 %v825_v17  ;;  %v1108_v17 = vrot.slane %v626_v48, %v1107_v10 }
  0x79   : > { %2008 = vmatprep.subr.mxu0 %v824_v18 }
  0x7a   : > { %2009 = vmatpush3.msra.mxu0 %v824_v18 }
  0x7b   : > { %2010 = vmatprep.subr.mxu0 %v823_v19 }
  0x7c   : > { %2011 = vmatpush3.msra.mxu0 %v823_v19 }
  0x7d   : > { %2012 = vmatprep.subr.mxu0 %v822_v22 }
  0x7e   : > { %2013 = vmatpush3.msra.mxu0 %v822_v22 }
  0x7f   : > { %2028 = vmatprep.subr.mxu0 %v1021_v24 }
 0x137   : > { %v1994_v20 = vpop.f32.mrf.mxu0 }
 0x139   : > { %v715_v21 = vpop.f32.mrf.mxu0 }
 0x13a   : > { %2214 = vtanh.f32 %v715_v21 }
 0x13b   : > { %2216 = vtanh.f32 %v1994_v20 }
 0x147   : > { %v2215_v25 = vpop.eup %2214 }
 0x148   : > { %1022 = vrot.lane.b32.xlu1 %v2215_v25, %s2519_s27  ;;  %826 = vrot.lane.b32.xlu0 %v2215_v25, %s2520_s23  ;;  %v2217_v26 = vpop.eup %2216 }
 0x149   : > { %2003 = vmatprep.mubr.msk.f32.mxu1 %vm642_vm0, %v2215_v25 }
 0x14a   : > { %2004 = vmatmul.mubr.msk.f32.vlgmr.msra.gmra.mxu1 %vm642_vm0, %v2217_v26 }
 0x14b   : > { %2018 = vmatpush3.msra.mxu1 %v923_v23 }
 0x14c   : > { %1024 = vrot.lane.b32.xlu1 %v2217_v26, %s2519_s27  ;;  %828 = vrot.lane.b32.xlu0 %v2217_v26, %s2520_s23  ;;  %s598_s27 = scalar_lea.vmem [#allocation14], %s2816_s18  ;;  %s1593_s23 = sshll.u32 %s2828_s16, 4  ;;  %s2856_s23 = int_to_ptr.vmem [resolvable:$true] %s1593_s23 }
 0x14d   : > { %2019 = vmatprep.subr.mxu1 %v922_v27  ;;  %s1625_s26 = sshll.u32 %s598_s27, 4  ;;  %s2861_s26 = int_to_ptr.vmem [resolvable:$true] %s1625_s26 }
 0x14e   : > { %2020 = vmatpush3.msra.mxu1 %v922_v27 }
 0x14f   : > { %2021 = vmatprep.subr.mxu1 %v921_v28 }
 0x150   : > { %926 = vrot.lane.b32.xlu1 %v2217_v26, %s2521_s17  ;;  %924 = vrot.lane.b32.xlu0 %v2215_v25, %s2521_s17  ;;  %v1379_v26 = vld [vmem:[#allocation10 + $0x10] sm:$0xff]  ;;  %s1609_s17 = sshll.u32 %s591_s25, 4  ;;  %s2858_s17 = int_to_ptr.vmem [resolvable:$true] %s1609_s17 }
 0x151   : > { %2022 = vmatpush3.msra.mxu1 %v921_v28  ;;  %s2352_s30 = scalar_lea.vmem %s2858_s17, 256 }
 0x152   : > { %2023 = vmatprep.subr.mxu1 %v920_v29  ;;  %p2353_p4 = scmp.ne.s32.totalorder %s2858_s17, %s2352_s30 }
 0x153   : > { %2024 = vmatpush3.msra.mxu1 %v920_v29 }
 0x154   : > { %2039 = vmatprep.subr.mxu1 %v1118_v30  ;;  %p2354_p9 = pnand %p2353_p4, %p2648_p5 }
 0x156   : > { %p2355_p8 = pneg %p2354_p9 }
 0x1ba   : > { %v1023_v31 = vpop.permute.xlu1 %1022  ;;  %v827_v32 = vpop.permute.xlu0 %826 }
 0x1bb   : > { %2014 = vmatprep.mubr.msk.f32.mxu0 %vm642_vm0, %v827_v32 }
 0x1be   : > { %v1025_v33 = vpop.permute.xlu1 %1024  ;;  %v829_v34 = vpop.permute.xlu0 %828 }
 0x1bf   : > { %2015 = vmatmul.mubr.msk.f32.vlgmr.msra.gmra.mxu0 %vm642_vm0, %v829_v34 }
 0x1c0   : > { %2029 = vmatpush3.msra.mxu0 %v1021_v24  ;;  %2036 = vmatprep.mubr.msk.f32.mxu0 %vm642_vm0, %v1023_v31 }
 0x1c1   : > { %2030 = vmatprep.subr.mxu0 %v1020_v35 }
 0x1c2   : > { %2031 = vmatpush3.msra.mxu0 %v1020_v35  ;;  %v927_v37 = vpop.permute.xlu1 %926  ;;  %v925_v38 = vpop.permute.xlu0 %924  ;;  %v1377_v35 = vld [vmem:[#allocation10] sm:$0xff] }
 0x1c3   : > { %2032 = vmatprep.subr.mxu0 %v1019_v36  ;;  %2025 = vmatprep.mubr.msk.f32.mxu1 %vm642_vm0, %v925_v38 }
 0x1c4   : > { %2033 = vmatpush3.msra.mxu0 %v1019_v36  ;;  %2026 = vmatmul.mubr.msk.f32.vlgmr.msra.gmra.mxu1 %vm642_vm0, %v927_v37 }
 0x1c5   : > { %2034 = vmatprep.subr.mxu0 %v1018_v39  ;;  %2040 = vmatpush3.msra.mxu1 %v1118_v30  ;;  %v1378_v30 = vld [vmem:[#allocation10 + $0x8] sm:$0xff] }
 0x1c6   : > { %2035 = vmatpush3.msra.mxu0 %v1018_v39  ;;  %2041 = vmatprep.subr.mxu1 %v1117_v40  ;;  %v1468_v39 = vld [vmem:[%s3019_s10 + $0x20] sm:$0xff] }
 0x1c7   : > { %2037 = vmatmul.mubr.msk.f32.vlgmr.msra.gmra.mxu0 %vm642_vm0, %v1025_v33  ;;  %2042 = vmatpush3.msra.mxu1 %v1117_v40  ;;  %v1467_v40 = vld [vmem:[%s3019_s10 + $0x18] sm:$0xff] }
 0x1c8   : > { %2043 = vmatprep.subr.mxu1 %v1116_v41  ;;  %2050 = vmatprep.subr.mxu0 %v1205_v45 }
 0x1c9   : > { %2044 = vmatpush3.msra.mxu1 %v1116_v41  ;;  %2051 = vmatpush3.msra.mxu0 %v1205_v45  ;;  %v1466_v41 = vld [vmem:[%s3019_s10 + $0x10] sm:$0xff] }
 0x1ca   : > { %2045 = vmatprep.subr.mxu1 %v1115_v42  ;;  %2052 = vmatprep.subr.mxu0 %v1204_v46 }
 0x1cb   : > { %2046 = vmatpush3.msra.mxu1 %v1115_v42  ;;  %2053 = vmatpush3.msra.mxu0 %v1204_v46  ;;  %v1465_v42 = vld [vmem:[%s3019_s10 + $0x8] sm:$0xff] }
 0x1cc   : > { %2054 = vmatprep.subr.mxu0 %v1203_v49  ;;  %2061 = vmatprep.subr.mxu1 %v1292_v51 }
 0x1cd   : > { %2055 = vmatpush3.msra.mxu0 %v1203_v49 }
 0x1ce   : > { %2056 = vmatprep.subr.mxu0 %v1202_v50 }
 0x1cf   : > { %2057 = vmatpush3.msra.mxu0 %v1202_v50 }
 0x1d0   : > { %2072 = vmatprep.subr.mxu0 %v1380_v53 }
 0x20a   : > { %v2005_v54 = vpop.f32.mrf.mxu1 }
 0x20b   : > { %v816_v55 = vadd.f32 %v2005_v54, %v814_v52 }
 0x20c   : > { %v802_v56 = vpop.f32.mrf.mxu1 }
 0x20d   : > { %v815_v57 = vadd.f32 %v814_v52, %v802_v56  ;;  %v818_v58 = vmul.f32 %v816_v55, %v2763_v6 }
 0x20f   : > { %v817_v59 = vmul.f32 %v815_v57, %v2761_v5  ;;  %v820_v61 = vadd.f32 %v818_v58, %v2759_v4 }
 0x211   : > { %v819_v60 = vadd.f32 %v817_v59, %v2757_v3 }
 0x213   : > { %2047 = vmatprep.mubr.msk.f32.mxu1 %vm642_vm0, %v819_v60 }
 0x214   : > { %2048 = vmatmul.mubr.msk.f32.vlgmr.msra.gmra.mxu1 %vm642_vm0, %v820_v61 }
 0x215   : > { %2062 = vmatpush3.msra.mxu1 %v1292_v51 }
 0x216   : > { %2063 = vmatprep.subr.mxu1 %v1291_v62 }
 0x217   : > { %2064 = vmatpush3.msra.mxu1 %v1291_v62 }
 0x218   : > { %2065 = vmatprep.subr.mxu1 %v1290_v63 }
 0x219   : > { %2066 = vmatpush3.msra.mxu1 %v1290_v63 }
 0x21a   : > { %2067 = vmatprep.subr.mxu1 %v1289_v0 }
 0x21b   : > { %2068 = vmatpush3.msra.mxu1 %v1289_v0 }
 0x27f   : > { %v2016_v8 = vpop.f32.mrf.mxu0 }
 0x280   : > { %v914_v9 = vadd.f32 %v2016_v8, %v912_v2 }
 0x281   : > { %v900_v11 = vpop.f32.mrf.mxu0 }
 0x282   : > { %v913_v13 = vadd.f32 %v912_v2, %v900_v11  ;;  %v916_v14 = vmul.f32 %v914_v9, %v2763_v6 }
 0x284   : > { %v915_v15 = vmul.f32 %v913_v13, %v2761_v5  ;;  %v2027_v16 = vpop.f32.mrf.mxu1  ;;  %v918_v21 = vadd.f32 %v916_v14, %v2759_v4 }
 0x285   : > { %v1012_v18 = vadd.f32 %v2027_v16, %v1010_v12 }
 0x286   : > { %v917_v19 = vadd.f32 %v915_v15, %v2757_v3  ;;  %v998_v20 = vpop.f32.mrf.mxu1 }
 0x287   : > { %v1011_v22 = vadd.f32 %v1010_v12, %v998_v20  ;;  %v2038_v23 = vpop.f32.mrf.mxu0  ;;  %v1014_v24 = vmul.f32 %v1012_v18, %v2763_v6 }
 0x288   : > { %v1110_v25 = vadd.f32 %v2038_v23, %v1108_v17  ;;  %2058 = vmatprep.mubr.msk.f32.mxu0 %vm642_vm0, %v917_v19 }
 0x289   : > { %v1013_v27 = vmul.f32 %v1011_v22, %v2761_v5  ;;  %v1096_v28 = vpop.f32.mrf.mxu0  ;;  %2059 = vmatmul.mubr.msk.f32.vlgmr.msra.gmra.mxu0 %vm642_vm0, %v918_v21  ;;  %v1016_v33 = vadd.f32 %v1014_v24, %v2759_v4 }
 0x28a   : > { %v1109_v29 = vadd.f32 %v1108_v17, %v1096_v28  ;;  %2073 = vmatpush3.msra.mxu0 %v1380_v53  ;;  %v1112_v32 = vmul.f32 %v1110_v25, %v2763_v6  ;;  %v1469_v6 = vld [vmem:[%s3019_s10 + $0x28] sm:$0xff] }
 0x28b   : > { %v1015_v31 = vadd.f32 %v1013_v27, %v2757_v3  ;;  %2074 = vmatprep.subr.mxu0 %v1379_v26 }
 0x28c   : > { %v1111_v34 = vmul.f32 %v1109_v29, %v2761_v5  ;;  %2075 = vmatpush3.msra.mxu0 %v1379_v26  ;;  %v1114_v37 = vadd.f32 %v1112_v32, %v2759_v4  ;;  %v1470_v4 = vld [vmem:[%s3019_s10 + $0x30] sm:$0xff] }
 0x28d   : > { %2076 = vmatprep.subr.mxu0 %v1378_v30  ;;  %2069 = vmatprep.mubr.msk.f32.mxu1 %vm642_vm0, %v1015_v31 }
 0x28e   : > { %v1113_v36 = vadd.f32 %v1111_v34, %v2757_v3  ;;  %2077 = vmatpush3.msra.mxu0 %v1378_v30  ;;  %2070 = vmatmul.mubr.msk.f32.vlgmr.msra.gmra.mxu1 %vm642_vm0, %v1016_v33  ;;  %v1471_v3 = vld [vmem:[%s3019_s10 + $0x38] sm:$0xff] }
 0x28f   : > { %2078 = vmatprep.subr.mxu0 %v1377_v35  ;;  %2083 = vmatprep.subr.mxu1 %v1471_v3 }
 0x290   : > { %2079 = vmatpush3.msra.mxu0 %v1377_v35  ;;  %2080 = vmatprep.mubr.msk.f32.mxu0 %vm642_vm0, %v1113_v36 }
 0x291   : > { %2081 = vmatmul.mubr.msk.f32.vlgmr.msra.gmra.mxu0 %vm642_vm0, %v1114_v37  ;;  %2084 = vmatpush3.msra.mxu1 %v1471_v3 }
 0x292   : > { %2085 = vmatprep.subr.mxu1 %v1470_v4 }
 0x293   : > { %2086 = vmatpush3.msra.mxu1 %v1470_v4 }
 0x294   : > { %2087 = vmatprep.subr.mxu1 %v1469_v6 }
 0x295   : > { %2088 = vmatpush3.msra.mxu1 %v1469_v6 }
 0x296   : > { %2089 = vmatprep.subr.mxu1 %v1468_v39 }
 0x297   : > { %2090 = vmatpush3.msra.mxu1 %v1468_v39 }
 0x298   : > { %2091 = vmatprep.subr.mxu1 %v1467_v40 }
 0x299   : > { %2092 = vmatpush3.msra.mxu1 %v1467_v40 }
 0x29a   : > { %2093 = vmatprep.subr.mxu1 %v1466_v41 }
 0x29b   : > { %2094 = vmatpush3.msra.mxu1 %v1466_v41 }
 0x29c   : > { %2095 = vmatprep.subr.mxu1 %v1465_v42 }
 0x29d   : > { %2096 = vmatpush3.msra.mxu1 %v1465_v42 }
 0x29e   : > { %2097 = vmatprep.subr.mxu1 %v1464_v43 }
 0x29f   : > { %2098 = vmatpush3.msra.mxu1 %v1464_v43 }
 0x2d4   : > { %v2049_v5 = vpop.f32.mrf.mxu1 }
 0x2d5   : > { %1201 = vst.msk [vmem:[%s2828_s16 + $0x8] sm:$0xff] %vm642_vm0, %v2049_v5 }
 0x2d6   : > { %v1191_v38 = vpop.f32.mrf.mxu1 }
 0x2d7   : > { %1200 = vst.msk [vmem:[%s2828_s16] sm:$0xff] %vm642_vm0, %v1191_v38  ;;  %s2872_s16 = scalar_lea.sflag [#allocation13], %s1569_s29 }
 0x349   : > { %v2060_v44 = vpop.f32.mrf.mxu0 }
 0x34a   : > { %1288 = vst.msk [vmem:[%s591_s25 + $0x8] sm:$0xff] %vm642_vm0, %v2060_v44 }
 0x34b   : > { %v1278_v45 = vpop.f32.mrf.mxu0 }
 0x34c   : > { %1287 = vst.msk [vmem:[%s591_s25] sm:$0xff] %vm642_vm0, %v1278_v45  ;;  %s2522_s25 = smov [#allocation12]  }
 0x34e   : > { %v2071_v46 = vpop.f32.mrf.mxu1 }
 0x34f   : > { %1375 = vst.msk [vmem:[%s598_s27 + $0x8] sm:$0xff] %vm642_vm0, %v2071_v46 }
 0x350   : > { %v1365_v47 = vpop.f32.mrf.mxu1 }
 0x351   : > { %1374 = vst.msk [vmem:[%s598_s27] sm:$0xff] %vm642_vm0, %v1365_v47  ;;  %v2082_v48 = vpop.f32.mrf.mxu0  ;;  %s2356_s27 = sshll.u32 %s2522_s25, 4  ;;  %s2357_s27 = int_to_ptr.vmem [resolvable:$false] %s2356_s27 }
 0x352   : > { %s2358_s0 = scalar_lea.vmem %s2357_s27, 512  ;;  %p2359_p7 = scmp.lt.s32.totalorder %s2858_s17, %s2357_s27 }
 0x353   : > { %v1453_v49 = vpop.f32.mrf.mxu0  ;;  %p2360_p11 = scmp.lt.s32.totalorder %s2358_s0, %s2352_s30 }
 0x354   : > { %2218 = vtanh.f32 %v1453_v49 }
 0x355   : > { %2220 = vtanh.f32 %v2082_v48  ;;  %p2361_p13 = por %p2360_p11, %p2359_p7 }
 0x357   : > { %p2362_p0 = pnand %p2361_p13, %p2355_p8 }
 0x361   : > { %v2219_v50 = vpop.eup %2218 }
 0x362   : > { %v2221_v51 = vpop.eup %2220  ;;  %2099 = vmatprep.mubr.msk.f32.mxu1 %vm1472_vm1, %v2219_v50 }
 0x363   : > { %2100 = vmatmul.mubr.msk.f32.vlgmr.msra.gmra.mxu1 %vm1472_vm1, %v2221_v51 }
 0x364   : > { %2365 = shalt.err (!%p2362_p0)
}
 0x365   : > { %s2366_s22 = scalar_lea.hbm %s2870_s24, 256  ;;  %s2370_s15 = scalar_lea.hbm %s3022_s13, 512 }
 0x366   : > { %p2367_p3 = scmp.ne.s32.totalorder %s2870_s24, %s2366_s22  ;;  %p2371_p12 = scmp.lt.s32.totalorder %s2870_s24, %s3022_s13 }
 0x367   : > { %p2372_p10 = scmp.lt.s32.totalorder %s2370_s15, %s2366_s22 }
 0x368   : > { %p2368_p1 = pnand %p2367_p3, %p2648_p5 }
 0x369   : > { %p2373_p4 = por %p2372_p10, %p2371_p12 }
 0x36a   : > { %p2369_p2 = pneg %p2368_p1 }
 0x36c   : > { %p2374_p9 = pnand %p2373_p4, %p2369_p2 }
 0x36e   : > { %2377 = shalt.err (!%p2374_p9)
}
 0x36f   : > { %s3035_s0 = smov 128   ;;  %s2524_s30 = smov 8  }
 0x370   : > { %2123 = dma.vmem_to_hbm [thread:$0]  (%p2648_p5), %s2858_s17, 256, %s2870_s24, %s2872_s16, %s3035_s0, %s3035_s0, %s2524_s30  }
 0x371   : > { %s2902_s22 = scalar_lea.hbm %s3021_s12, %s2864_s21  ;;  %s1565_s29 = scalar_lea.sflag [#allocation4], %s2813_s20 }
 0x372   : > { %s2378_s6 = scalar_lea.vmem %s2856_s23, 256  ;;  %s2525_s15 = smov [#allocation11]  }
 0x373   : > { %p2379_p8 = scmp.ne.s32.totalorder %s2856_s23, %s2378_s6  ;;  %s2382_s25 = sshll.u32 %s2525_s15, 4  ;;  %s2383_s25 = int_to_ptr.vmem [resolvable:$false] %s2382_s25 }
 0x374   : > { %s2384_s2 = scalar_lea.vmem %s2383_s25, 512  ;;  %p2385_p13 = scmp.lt.s32.totalorder %s2856_s23, %s2383_s25 }
 0x375   : > { %p2380_p7 = pnand %p2379_p8, %p2648_p5  ;;  %p2386_p0 = scmp.lt.s32.totalorder %s2384_s2, %s2378_s6 }
 0x377   : > { %p2381_p11 = pneg %p2380_p7  ;;  %p2387_p3 = por %p2386_p0, %p2385_p13 }
 0x379   : > { %p2388_p1 = pnand %p2387_p3, %p2381_p11 }
 0x37b   : > { %2391 = shalt.err (!%p2388_p1)
}
 0x37c   : > { %s2392_s17 = scalar_lea.hbm %s2902_s22, 256  ;;  %s2396_s27 = scalar_lea.hbm %s3021_s12, 512 }
 0x37d   : > { %p2393_p2 = scmp.ne.s32.totalorder %s2902_s22, %s2392_s17  ;;  %p2397_p4 = scmp.lt.s32.totalorder %s2902_s22, %s3021_s12 }
 0x37e   : > { %p2398_p9 = scmp.lt.s32.totalorder %s2396_s27, %s2392_s17 }
 0x37f   : > { %p2394_p12 = pnand %p2393_p2, %p2648_p5 }
 0x380   : > { %p2399_p8 = por %p2398_p9, %p2397_p4 }
 0x381   : > { %p2395_p10 = pneg %p2394_p12 }
 0x383   : > { %p2400_p7 = pnand %p2399_p8, %p2395_p10 }
 0x385   : > { %2403 = shalt.err (!%p2400_p7)
}
 0x386   : > { %s3063_s2 = smov 128   ;;  %s1624_s25 = scalar_lea.hbm %s3023_s14, %s2864_s21 }
 0x387   : > { %2122 = dma.vmem_to_hbm [thread:$0]  (%p2648_p5), %s2856_s23, 256, %s2902_s22, %s1565_s29, %s3063_s2, %s3063_s2, %s2524_s30  }
 0x388   : > { %s2404_s17 = scalar_lea.vmem %s2861_s26, 256  ;;  %s2526_s24 = smov [#allocation14]  }
 0x389   : > { %p2405_p11 = scmp.ne.s32.totalorder %s2861_s26, %s2404_s17  ;;  %s2408_s1 = sshll.u32 %s2526_s24, 4  ;;  %s2409_s1 = int_to_ptr.vmem [resolvable:$false] %s2408_s1 }
 0x38a   : > { %s2410_s27 = scalar_lea.vmem %s2409_s1, 512  ;;  %p2411_p3 = scmp.lt.s32.totalorder %s2861_s26, %s2409_s1 }
 0x38b   : > { %p2406_p13 = pnand %p2405_p11, %p2648_p5  ;;  %p2412_p1 = scmp.lt.s32.totalorder %s2410_s27, %s2404_s17 }
 0x38d   : > { %p2407_p0 = pneg %p2406_p13  ;;  %p2413_p2 = por %p2412_p1, %p2411_p3 }
 0x38f   : > { %p2414_p12 = pnand %p2413_p2, %p2407_p0 }
 0x391   : > { %2417 = shalt.err (!%p2414_p12)
}
 0x392   : > { %s2418_s15 = scalar_lea.hbm %s1624_s25, 256  ;;  %s2422_s29 = scalar_lea.hbm %s3023_s14, 512 }
 0x393   : > { %p2419_p10 = scmp.ne.s32.totalorder %s1624_s25, %s2418_s15  ;;  %p2423_p8 = scmp.lt.s32.totalorder %s1624_s25, %s3023_s14 }
 0x394   : > { %p2424_p7 = scmp.lt.s32.totalorder %s2422_s29, %s2418_s15 }
 0x395   : > { %p2420_p4 = pnand %p2419_p10, %p2648_p5 }
 0x396   : > { %p2425_p11 = por %p2424_p7, %p2423_p8 }
 0x397   : > { %p2421_p9 = pneg %p2420_p4 }
 0x399   : > { %p2426_p13 = pnand %p2425_p11, %p2421_p9 }
 0x39b   : > { %2429 = shalt.err (!%p2426_p13)
}
 0x39c   : > { %2124 = dma.vmem_to_hbm [thread:$0]  (%p2648_p5), %s2861_s26, 256, %s1624_s25, %s2872_s16, %s3063_s2, %s3063_s2, %s2524_s30  }
 0x39d   : > { %v1901_v52 = vld [vmem:[%s3020_s11] ss:$0 sm:$0xff]  ;;  %s605_s1 = scalar_lea.vmem [#allocation15], %s2816_s18  ;;  %s3064_s26 = sld [smem:[#allocation33_spill]] }
 0x39e   : > { %s1641_s27 = sshll.u32 %s605_s1, 4  ;;  %s1580_s18 = scalar_lea.sflag [#allocation16], %s2813_s20  ;;  %s2956_s27 = int_to_ptr.vmem [resolvable:$true] %s1641_s27 }
 0x39f   : > { %s2430_s25 = scalar_lea.vmem %s2956_s27, 256  ;;  %s2527_s22 = smov [#allocation15]  }
 0x3a0   : > { %p2431_p0 = scmp.ne.s32.totalorder %s2956_s27, %s2430_s25  ;;  %s2434_s29 = sshll.u32 %s2527_s22, 4  ;;  %s2435_s29 = int_to_ptr.vmem [resolvable:$false] %s2434_s29 }
 0x3a1   : > { %s2436_s6 = scalar_lea.vmem %s2435_s29, 512  ;;  %p2437_p2 = scmp.lt.s32.totalorder %s2956_s27, %s2435_s29 }
 0x3a2   : > { %p2432_p3 = pnand %p2431_p0, %p2648_p5  ;;  %p2438_p12 = scmp.lt.s32.totalorder %s2436_s6, %s2430_s25 }
 0x3a3   : > { %s2963_s16 = scalar_lea.hbm %s3064_s26, %s2864_s21 }
 0x3a4   : > { %p2433_p1 = pneg %p2432_p3  ;;  %p2439_p10 = por %p2438_p12, %p2437_p2 }
 0x3a6   : > { %p2440_p4 = pnand %p2439_p10, %p2433_p1 }
 0x423   : > { %v2101_v53 = vpop.f32.mrf.mxu1 }
 0x424   : > { %v1561_v54 = vadd.f32 %v2101_v53, %v1901_v52 }
 0x425   : > { %v1545_v55 = vpop.f32.mrf.mxu1 }
 0x426   : > { %1563 = vst.msk [vmem:[%s605_s1 + $0x8] sm:$0xff] %vm642_vm0, %v1561_v54  ;;  %v1560_v56 = vadd.f32 %v1901_v52, %v1545_v55 }
 0x428   : > { %1562 = vst.msk [vmem:[%s605_s1] sm:$0xff] %vm642_vm0, %v1560_v56 }
 0x429   : > { %2443 = shalt.err (!%p2440_p4)
}
 0x42a   : > { %s2444_s21 = scalar_lea.hbm %s2963_s16, 256  ;;  %s2448_s17 = scalar_lea.hbm %s3064_s26, 512 }
 0x42b   : > { %p2445_p9 = scmp.ne.s32.totalorder %s2963_s16, %s2444_s21  ;;  %p2449_p11 = scmp.lt.s32.totalorder %s2963_s16, %s3064_s26 }
 0x42c   : > { %p2450_p13 = scmp.lt.s32.totalorder %s2448_s17, %s2444_s21 }
 0x42d   : > { %p2446_p8 = pnand %p2445_p9, %p2648_p5 }
 0x42e   : > { %p2451_p0 = por %p2450_p13, %p2449_p11 }
 0x42f   : > { %p2447_p7 = pneg %p2446_p8 }
 0x431   : > { %p2452_p3 = pnand %p2451_p0, %p2447_p7 }
 0x433   : > { %2455 = shalt.err (!%p2452_p3)
}
 0x434   : > { %2125 = dma.vmem_to_hbm [thread:$0]  (%p2648_p5), %s2956_s27, 256, %s2963_s16, %s1580_s18, %s3063_s2, %s3063_s2, %s2524_s30  }
 0x435 PF: > { %s3065_s15 = sld [smem:[#allocation25_spill]] }
 0x436   : > { %s3066_s23 = sld [smem:[#allocation23_spill]] }
 0x43b   : > { %p2169_p1 = scmp.ge.s32.totalorder %s3065_s15, 2 }
 0x43c   : > { %s1656_s22 = sand.u32 1, %s3066_s23  }
 0x43d   : > { %p2147_p2 = pnand %p2169_p1, %p2652_p6  ;;  %s1657_s29 = scalar_lea.sflag [#allocation4], %s1656_s22 }
 0x43f   : > { %p2148_p12 = pneg %p2147_p2 }
 0x441   : > { %2485 = dma.done.wait (%p2148_p12), %s1657_s29, 256  }
 0x442   : > { %2487 = vsyncadd (%p2148_p12), %s1657_s29, 4294967040  ;;  %s3068_s28 = sadd.s32 4294967294, %s3065_s15  }
 0x443   : > { %s1665_s6 = sand.u32 1, %s3068_s28  }
 0x444   : > { %s1666_s21 = scalar_lea.sflag [#allocation13], %s1665_s6 }
 0x445   : > { %2489 = dma.done.wait (%p2148_p12), %s1666_s21, 512  }
 0x446   : > { %2491 = vsyncadd (%p2148_p12), %s1666_s21, 4294966784  ;;  %s1684_s20 = scalar_lea.sflag [#allocation16], %s1656_s22 }
 0x447   : > { %2493 = dma.done.wait (%p2148_p12), %s1684_s20, 256  }
 0x448   : > { %2495 = vsyncadd (%p2148_p12), %s1684_s20, 4294967040  ;;  %s3069_s21 = sld [smem:[#allocation26_spill]]  ;;  %s3072_s18 = smov %s2502_s19 }
 0x449   : > { %s3070_s30 = sld [smem:[#allocation24_spill]] }
 0x44a   : > { %s3071_s20 = sld [smem:[#allocation27_spill]] }
 0x44e   : > { %p35_p5 = scmp.ge.s32.totalorder %s3069_s21, 4  }
 0x44f   : > { %s3073_s19 = smov %s3070_s30 }
 0x450   :  { %37 = sbr.rel (!%p35_p5) target bundleno = 16 (0x10), region = 179 }
 0x455   :  { %1689 = vsyncpa [#allocation3], 1 }
 0x456   :  { %1691 = vsyncpa [#allocation3 + $0x1], 1 }
 0x457   :  { %1692 = vsyncpa [#allocation6], 1 }
 0x458   :  { %1693 = vsyncpa [#allocation9], 1 }
 0x459   :  { %1694 = vsyncpa [#allocation4], 1 }
 0x45a   :  { %1696 = vsyncpa [#allocation4 + $0x1], 1 }
 0x45b   :  { %1697 = vsyncpa [#allocation13], 1 }
 0x45c   :  { %1699 = vsyncpa [#allocation13 + $0x1], 1 }
 0x45d   :  { %1700 = vsyncpa [#allocation16], 1 }
 0x45e   :  { %1702 = vsyncpa [#allocation16 + $0x1], 1 }

</bundles_post_ra>
